<compile_context>
chip_gen: v7x
topology: tpu7x:2x2x1
jax: 0.10.0
libtpu: 0.0.40
codegen_flags: <defaults>
</compile_context>

<pallas_src>
import math

import jax
import jax.numpy as jnp
from jax.experimental import pallas as pl
from jax.experimental.pallas import tpu as pltpu

_LANE = 128


def _log1p_kernel(x_ref, o_ref):
    # Elementwise hot path on the whole VMEM tile (VPU + EUP).
    o_ref[...] = jnp.log1p(x_ref[...])


def _sublane_tile(itemsize: int) -> int:
    # Native sublane tile height: 8 for 32-bit, 16 for 16-bit, 32 for 8-bit.
    return max(8, 32 // max(1, itemsize))


def log1p_pallas(
    x: jax.Array,
    *,
    target_block_bytes: int = 4 << 20,   # ~4 MiB blocks (v7x-friendly, safe on v5e/v6e)
    min_pallas_bytes: int = 128 << 10,   # below ~128 KiB, let XLA fuse jnp.log1p
) -> jax.Array:
    """Elementwise log1p via a Pallas TPU kernel. Matches torch.log1p(x)."""
    orig_shape = x.shape

    # torch.log1p promotes integer inputs to floating point.
    if not jnp.issubdtype(x.dtype, jnp.floating):
        x = x.astype(jnp.float32)
    dtype = x.dtype
    itemsize = jnp.dtype(dtype).itemsize

    n = x.size
    total_bytes = n * itemsize

    # Small tensors, or tensors whose size is not a multiple of the 128-lane
    # width: plain jnp.log1p hits the same HBM roofline with zero extra copies
    # (no pad / slice passes) and can fuse with neighbouring ops.
    if total_bytes < min_pallas_bytes or n % _LANE != 0:
        return jnp.log1p(x)

    sublane = _sublane_tile(itemsize)

    # Pick the widest lane-dense column count that divides n exactly (no pad).
    cols = _LANE
    for c in (512, 384, 256, 128):
        if n % c == 0:
            cols = c
            break
    rows = n // cols
    slab = x.reshape(rows, cols)

    # Block sizing: one block if the slab fits the target; otherwise split into
    # an even number of steps (balances v7x's two TensorCores) with block_rows
    # rounded up to the native sublane tile so boundary stores stay unmasked.
    if total_bytes <= target_block_bytes or rows <= sublane:
        block_rows = rows
    else:
        num_blocks = math.ceil(total_bytes / target_block_bytes)
        if num_blocks % 2:
            num_blocks += 1
        block_rows = math.ceil(rows / num_blocks)
        block_rows = math.ceil(block_rows / sublane) * sublane
        block_rows = min(block_rows, rows)

    grid = (pl.cdiv(rows, block_rows),)  # ragged last block handled by Pallas

    out = pl.pallas_call(
        _log1p_kernel,
        out_shape=jax.ShapeDtypeStruct((rows, cols), dtype),
        grid_spec=pltpu.PrefetchScalarGridSpec(
            num_scalar_prefetch=0,
            grid=grid,
            in_specs=[pl.BlockSpec((block_rows, cols), lambda i: (i, 0))],
            out_specs=pl.BlockSpec((block_rows, cols), lambda i: (i, 0)),
        ),
        compiler_params=pltpu.CompilerParams(
            dimension_semantics=("parallel",),
            vmem_limit_bytes=32 << 20,
        ),
        cost_estimate=pl.CostEstimate(
            flops=n, transcendentals=n, bytes_accessed=2 * total_bytes
        ),
    )(slab)

    return out.reshape(orig_shape)


if __name__ == "__main__":
    key = jax.random.PRNGKey(0)
    k1, k2, k3, k4 = jax.random.split(key, 4)

    # 1) Small NCHW-like input consistent with typical GMVAE usage
    #    (below the Pallas threshold -> fused jnp.log1p path).
    x = jax.random.uniform(
        k1, (2, 4, 16, 16), dtype=jnp.float32, minval=0.0, maxval=10.0
    )
    y = log1p_pallas(x)
    jax.block_until_ready(y)
    assert y.shape == x.shape and y.dtype == x.dtype
    assert jnp.allclose(y, jnp.log1p(x), atol=1e-6, rtol=1e-6)

    # 2) 512-aligned input large enough for the Pallas path; a smaller block
    #    target forces a multi-step (even, megacore-friendly) grid.
    x_big = jax.random.uniform(
        k2, (2, 8, 64, 64), dtype=jnp.float32, minval=0.0, maxval=5.0
    )
    y_big = log1p_pallas(x_big, target_block_bytes=64 << 10, min_pallas_bytes=64 << 10)
    jax.block_until_ready(y_big)
    assert y_big.shape == x_big.shape and y_big.dtype == x_big.dtype
    assert jnp.allclose(y_big, jnp.log1p(x_big), atol=1e-6, rtol=1e-6)

    # 3) 128-aligned but not 256/512-aligned: exercises the narrow-cols path
    #    with a single full-slab block and no padding anywhere.
    x_odd = jax.random.uniform(
        k3, (5, 7, 128, 13), dtype=jnp.float32, minval=0.0, maxval=5.0
    )
    y_odd = log1p_pallas(x_odd, min_pallas_bytes=64 << 10)
    jax.block_until_ready(y_odd)
    assert y_odd.shape == x_odd.shape and y_odd.dtype == x_odd.dtype
    assert jnp.allclose(y_odd, jnp.log1p(x_odd), atol=1e-6, rtol=1e-6)

    # 4) Non-128-aligned size: clean fallback (no pad / slice HBM passes).
    x_rag = jax.random.uniform(
        k4, (3, 7, 31, 45), dtype=jnp.float32, minval=0.0, maxval=5.0
    )
    y_rag = log1p_pallas(x_rag)
    jax.block_until_ready(y_rag)
    assert y_rag.shape == x_rag.shape and y_rag.dtype == x_rag.dtype
    assert jnp.allclose(y_rag, jnp.log1p(x_rag), atol=1e-6, rtol=1e-6)

    print("KERNEL_OK")
</pallas_src>

<mosaic_0001>
module attributes {stable_mosaic.version = 11 : i64} {
  func.func @_log1p_kernel(%arg0: i32, %arg1: memref<32x512xf32, #tpu.memory_space<vmem>>, %arg2: memref<32x512xf32, #tpu.memory_space<vmem>>) attributes {dimension_semantics = [#tpu.dimension_semantics<parallel>], iteration_bounds = array<i64: 4>, scalar_prefetch = 0 : i64, scratch_operands = 0 : i64, tpu.core_type = #tpu.core_type<tc>, window_params = [{transform_indices = @transform_0, window_bounds = array<i64: 32, 512>}, {transform_indices = @transform_1, window_bounds = array<i64: 32, 512>}]} {
    %c0 = arith.constant 0 : index
    %c0_0 = arith.constant 0 : index
    %0 = vector.load %arg1[%c0, %c0_0] : memref<32x512xf32, #tpu.memory_space<vmem>>, vector<32x512xf32>
    %1 = math.log1p %0 : vector<32x512xf32>
    %c0_1 = arith.constant 0 : index
    %c0_2 = arith.constant 0 : index
    %2 = vector.load %arg2[%c0_1, %c0_2] : memref<32x512xf32, #tpu.memory_space<vmem>>, vector<32x512xf32>
    tpu.vector_store %arg2[%c0_1, %c0_2], %1 {strides = array<i32>} : memref<32x512xf32, #tpu.memory_space<vmem>>, vector<32x512xf32>,
    return
  }
  func.func @transform_0(%arg0: i32) -> (i32, i32) {
    %c0_i32 = arith.constant 0 : i32
    %c0_i32_0 = arith.constant 0 : i32
    return %arg0, %c0_i32 : i32, i32
  }
  func.func @transform_1(%arg0: i32) -> (i32, i32) {
    %c0_i32 = arith.constant 0 : i32
    %c0_i32_0 = arith.constant 0 : i32
    return %arg0, %c0_i32 : i32, i32
  }
}

</mosaic_0001>

<bundles_post_ra>
// kernel: tpu_custom_call.1
= control target key start
LH: loop header
LB: loop body
LE: loop exit
PB: predicated region body
PF: predicated region fallthrough
CT: control target
= control target key end

     0   :  { %6 = vsyncpa [#allocation3], 0  ;;  %s921_s0 = inlined_call_operand.hbm [shape: f32[128,512], index: 0, kind: input, shape index: {}]   ;;  %s922_s1 = inlined_call_operand.hbm [shape: f32[128,512], index: 1, kind: output, shape index: {}]  }
   0x1   :  { %8 = vsyncpa [#allocation3 + $0x1], 0 }
   0x2   :  { %9 = vsyncpa [#allocation4], 0 }
   0x3   :  { %11 = vsyncpa [#allocation4 + $0x1], 0  ;;  %s618_s6 = smov 0   ;;  %s620_s7 = smov 0  }
   0x4   :  { %s622_s8 = smov 0   ;;  %s624_s9 = smov 0  }
   0x5 LB: > { %s639_s10 = sadd.s32 4294967295, %s600_s9   ;;  %s402_s11 = sadd.s32 4294967294, %s600_s9   ;;  %s600_s9 = sphi %s624_s9, %s954_s9   ;;  %s596_s8 = sphi %s622_s8, %s953_s8   ;;  %s592_s7 = sphi %s620_s7, %s952_s7   ;;  %s588_s6 = sphi %s618_s6, %s951_s6  }
   0x6   : > { %s643_s12 = sadd.s32 1, %s600_s9   ;;  %s24_s13 = sadd.s32 1, %s596_s8 }
   0x7   : > { %s21_s14 = ssub.s32 %s600_s9, %s643_s12  ;;  %p31_p0 = scmp.ne.s32.totalorder %s596_s8, %s592_s7 }
   0x8   : > { %p22_p1 = scmp.eq.s32.totalorder %s21_s14, 0  ;;  %p32_p2 = scmp.eq.s32.totalorder %s600_s9, 0 }
   0x9   : > { %p37_p3 = scmp.ne.s32.totalorder %s592_s7, %s588_s6  ;;  %p38_p4 = scmp.eq.s32.totalorder %s639_s10, 0 }
   0xa   : > { %s655_s15 = scalar_select %p22_p1, %s596_s8, %s24_s13  }
   0xb   : > { %p657_p5 = por %p32_p2, %p31_p0  ;;  %p661_p6 = por %p38_p4, %p37_p3 }
   0xc   : > { %p61_p7 = scmp.eq.s32.totalorder %s639_s10, 3  ;;  %p67_p8 = scmp.eq.s32.totalorder %s402_s11, 3 }
   0xd   : > { %p434_p9 = scmp.lt.s32.totalorder %s600_s9, 4  ;;  %s87_s20 = sand.u32 1, %s596_s8  }
   0xe   : > { %p667_p10 = por %p61_p7, %p31_p0  ;;  %p671_p11 = por %p67_p8, %p37_p3 }
   0xf   : > { %s419_s21 = sshll.u32 %s600_s9, 11  ;;  %s405_s22 = sshll.u32 %s87_s20, 7 }
  0x10   : > { %s926_s18 = scalar_select %p667_p10, 1, 0 }
  0x11   : > { %s927_s19 = scalar_select %p671_p11, 1, 0 }
  0x12   : > { %s680_s25 = scalar_lea.hbm %s921_s0, %s419_s21  ;;  %s91_s26 = scalar_lea.vmem [#allocation2], %s405_s22 }
  0x13   : > { %s99_s27 = sshll.u32 %s91_s26, 4  ;;  %p684_p12 = pnand %p434_p9, %p657_p5  ;;  %s688_s27 = int_to_ptr.vmem [resolvable:$true] %s99_s27 }
  0x14   : > { %s690_s29 = scalar_lea.sflag [#allocation3], %s87_s20  ;;  %s504_s30 = scalar_lea.hbm %s680_s25, 2048 }
  0x15   : > { %p505_p13 = scmp.ne.s32.totalorder %s680_s25, %s504_s30  ;;  %p506_p0 = pneg %p684_p12 }
  0x16   : > { %s509_s4 = scalar_lea.hbm %s921_s0, 8192  ;;  %p510_p3 = scmp.lt.u32.totalorder %s680_s25, %s921_s0 }
  0x17   : > { %p507_p1 = pnand %p506_p0, %p505_p13  ;;  %p511_p4 = scmp.lt.u32.totalorder %s509_s4, %s504_s30 }
  0x18   : > { %p513_p7 = scmp.lt.u32.totalorder %s504_s30, %s680_s25 }
  0x19   : > { %p508_p2 = pneg %p507_p1  ;;  %p512_p5 = por %p511_p4, %p510_p3 }
  0x1b   : > { %p514_p8 = por %p513_p7, %p512_p5 }
  0x1d   : > { %p515_p9 = pnand %p514_p8, %p508_p2 }
  0x1f   : > { %518 = shalt.err (!%p515_p9)
}
  0x20   : > { %s519_s13 = scalar_lea.vmem %s688_s27, 2048  ;;  %s602_s14 = smov [#allocation2]  }
  0x21   : > { %p520_p13 = scmp.ne.s32.totalorder %s688_s27, %s519_s13  ;;  %s524_s16 = sshll.u32 %s602_s14, 4  ;;  %s525_s16 = int_to_ptr.vmem [resolvable:$false] %s524_s16 }
  0x22   : > { %s526_s20 = scalar_lea.vmem %s525_s16, 4096  ;;  %p527_p10 = scmp.lt.s32.totalorder %s688_s27, %s525_s16 }
  0x23   : > { %p522_p1 = pnand %p520_p13, %p506_p0  ;;  %p528_p3 = scmp.lt.s32.totalorder %s526_s20, %s519_s13 }
  0x25   : > { %p523_p11 = pneg %p522_p1  ;;  %p529_p4 = por %p528_p3, %p527_p10 }
  0x27   : > { %p530_p5 = pnand %p529_p4, %p523_p11 }
  0x29   : > { %533 = shalt.err (!%p530_p5)
}
  0x2a   : > { %s603_s21 = smov 512   ;;  %s604_s22 = smov 32  }
  0x2b   : > { %429 = dma.hbm_to_vmem [thread:$0]  (!%p684_p12), %s680_s25, 2048, %s688_s27, %s690_s29, %s603_s21, %s603_s21, %s604_s22  }
  0x2c   : > { %p409_p0 = scmp.ge.s32.totalorder %s600_s9, 1  ;;  %p107_p2 = scmp.lt.s32.totalorder %s600_s9, 5 }
  0x2e   : > { %p108_p7 = pnand %p409_p0, %p107_p2 }
  0x2f   : > { %s721_s23 = sand.u32 (!%p108_p7), 1, %s592_s7  }
  0x30   : > { %111 = sbr.rel (%p108_p7) target bundleno = 115 (0x73), region = 24  ;;  %s410_s24 = sshll.u32 (!%p108_p7), %s721_s23, 7 }
  0x31   : > { %s114_s26 = scalar_lea.sflag (!%p108_p7), [#allocation3], %s721_s23  ;;  %s727_s30 = scalar_lea.vmem (!%p108_p7), [#allocation2], %s410_s24 }
  0x37   : > { %579 = dma.done.wait (%p661_p6), %s114_s26, 2048  }
  0x38   : > { %581 = vsyncadd (%p661_p6), %s114_s26, 4294965248  ;;  %v138_v0 = vld [vmem:[%s727_s30] sm:$0xff]  ;;  %v139_v1 = vld [vmem:[%s727_s30 + $0x8] sm:$0xff]  ;;  %s785_s17 = scalar_lea.vmem [#allocation5], %s410_s24  ;;  %s421_s25 = sshll.u32 %s639_s10, 11 }
  0x39   : > { %v140_v2 = vld [vmem:[%s727_s30 + $0x10] sm:$0xff]  ;;  %v154_v3 = vadd.f32 1.0, %v138_v0  ;;  %v163_v4 = vadd.f32 1.0, %v139_v1  ;;  %v157_v5 = vmul.f32 -0.5, %v138_v0  ;;  %v141_v7 = vld [vmem:[%s727_s30 + $0x18] sm:$0xff]  ;;  %v166_v8 = vmul.f32 -0.5, %v139_v1  ;;  %s875_s2 = scalar_lea.hbm %s922_s1, %s421_s25 }
  0x3a   : > { %v172_v6 = vadd.f32 1.0, %v140_v2  ;;  %v175_v9 = vmul.f32 -0.5, %v140_v2  ;;  %v160_v10 = vand.u32 2147483647, %v138_v0  ;;  %v142_v11 = vld [vmem:[%s727_s30 + $0x20] sm:$0xff]  ;;  %v181_v13 = vadd.f32 1.0, %v141_v7 }
  0x3b   : > { %472 = vlog2.f32 %v154_v3  ;;  %v169_v12 = vand.u32 2147483647, %v139_v1  ;;  %v143_v14 = vld [vmem:[%s727_s30 + $0x28] sm:$0xff]  ;;  %v158_v15 = vadd.f32 1.0, %v157_v5  ;;  %v178_v16 = vand.u32 2147483647, %v140_v2 }
  0x3c   : > { %474 = vlog2.f32 %v163_v4  ;;  %v184_v17 = vmul.f32 -0.5, %v141_v7  ;;  %v167_v18 = vadd.f32 1.0, %v166_v8  ;;  %v176_v19 = vadd.f32 1.0, %v175_v9  ;;  %v740_v21 = vld [vmem:[%s727_s30 + $0x30] sm:$0xff]  ;;  %v751_v28 = vld [vmem:[%s727_s30 + $0x38] sm:$0xff]  ;;  %v755_v32 = vld [vmem:[%s727_s30 + $0x40] sm:$0xff] }
  0x3d   : > { %476 = vlog2.f32 %v172_v6  ;;  %v190_v20 = vadd.f32 1.0, %v142_v11  ;;  %vm742_vm0 = vcmp.lt.f32.partialorder %v160_v10, 0.0004427343  ;;  %v187_v23 = vand.u32 2147483647, %v141_v7  ;;  %v773_v49 = vld [vmem:[%s727_s30 + $0x48] sm:$0xff] }
  0x3e   : > { %478 = vlog2.f32 %v181_v13  ;;  %v193_v24 = vmul.f32 -0.5, %v142_v11  ;;  %v199_v25 = vadd.f32 1.0, %v143_v14  ;;  %vm746_vm1 = vcmp.lt.f32.partialorder %v169_v12, 0.0004427343  ;;  %v781_v58 = vld [vmem:[%s727_s30 + $0x50] sm:$0xff]  ;;  %v802_v8 = vld [vmem:[%s727_s30 + $0x58] sm:$0xff] }
  0x3f   : > { %480 = vlog2.f32 %v190_v20  ;;  %v196_v27 = vand.u32 2147483647, %v142_v11  ;;  %v185_v29 = vadd.f32 1.0, %v184_v17  ;;  %v202_v30 = vmul.f32 -0.5, %v143_v14  ;;  %v815_v17 = vld [vmem:[%s727_s30 + $0x60] sm:$0xff]  ;;  %v152_v37 = vld [vmem:[%s727_s30 + $0x70] sm:$0xff] }
  0x40   : > { %482 = vlog2.f32 %v199_v25  ;;  %v208_v31 = vadd.f32 1.0, %v740_v21  ;;  %v159_v33 = vmul.f32 %v158_v15, %v138_v0  ;;  %v168_v34 = vmul.f32 %v167_v18, %v139_v1  ;;  %s329_s27 = sshll.u32 %s785_s17, 4  ;;  %s315_s10 = scalar_lea.sflag [#allocation4], %s721_s23  ;;  %s877_s27 = int_to_ptr.vmem [resolvable:$true] %s329_s27 }
  0x41   : > { %v177_v35 = vmul.f32 %v176_v19, %v140_v2  ;;  %vm757_vm2 = vcmp.lt.f32.partialorder %v178_v16, 0.0004427343  ;;  %vm761_vm3 = vcmp.lt.f32.partialorder %v187_v23, 0.0004427343  ;;  %v194_v38 = vadd.f32 1.0, %v193_v24  ;;  %s534_s3 = scalar_lea.vmem %s877_s27, 2048 }
  0x42   : > { %484 = vlog2.f32 %v208_v31  ;;  %v217_v39 = vadd.f32 1.0, %v751_v28  ;;  %vm766_vm4 = vcmp.lt.f32.partialorder %v196_v27, 0.0004427343  ;;  %v205_v42 = vand.u32 2147483647, %v143_v14  ;;  %p535_p6 = scmp.ne.s32.totalorder %s877_s27, %s534_s3  ;;  %p949_p10 = scmp.ne.s32.totalorder %s926_s18, 0 }
  0x43   : > { %v211_v43 = vmul.f32 -0.5, %v740_v21  ;;  %v226_v44 = vadd.f32 1.0, %v755_v32  ;;  %v186_v47 = vmul.f32 %v185_v29, %v141_v7  ;;  %v203_v48 = vadd.f32 1.0, %v202_v30  ;;  %s605_s4 = smov [#allocation5]  }
  0x44   : > { %486 = vlog2.f32 %v217_v39  ;;  %v220_v52 = vmul.f32 -0.5, %v751_v28  ;;  %v229_v53 = vmul.f32 -0.5, %v755_v32  ;;  %v195_v56 = vmul.f32 %v194_v38, %v142_v11  ;;  %p536_p11 = pnand %p535_p6, %p949_p10  ;;  %s538_s5 = sshll.u32 %s605_s4, 4  ;;  %s539_s5 = int_to_ptr.vmem [resolvable:$false] %s538_s5 }
  0x45   : > { %v473_v40 = vpop.eup %472  ;;  %488 = vlog2.f32 %v226_v44  ;;  %v214_v57 = vand.u32 2147483647, %v740_v21  ;;  %vm790_vm5 = vcmp.lt.f32.partialorder %v205_v42, 0.0004427343  ;;  %v212_v62 = vadd.f32 1.0, %v211_v43  ;;  %s540_s11 = scalar_lea.vmem %s539_s5, 4096  ;;  %p541_p8 = scmp.lt.s32.totalorder %s877_s27, %s539_s5 }
  0x46   : > { %v475_v45 = vpop.eup %474  ;;  %v156_v46 = vmul.f32 0.6931472, %v473_v40  ;;  %v235_v63 = vadd.f32 1.0, %v773_v49  ;;  %v204_v2 = vmul.f32 %v203_v48, %v143_v14  ;;  %v223_v3 = vand.u32 2147483647, %v751_v28  ;;  %p537_p12 = pneg %p536_p11  ;;  %p542_p9 = scmp.lt.s32.totalorder %s540_s11, %s534_s3 }
  0x47   : > { %v477_v50 = vpop.eup %476  ;;  %v165_v51 = vmul.f32 0.6931472, %v475_v45  ;;  %v221_v5 = vadd.f32 1.0, %v220_v52  ;;  %v230_v6 = vadd.f32 1.0, %v229_v53  ;;  %v244_v7 = vadd.f32 1.0, %v781_v58 }
  0x48   : > { %v162_v54 = vsel %vm742_vm0, %v159_v33, %v156_v46  ;;  %v174_v55 = vmul.f32 0.6931472, %v477_v50  ;;  %v479_v59 = vpop.eup %478  ;;  %490 = vlog2.f32 %v235_v63  ;;  %vm806_vm6 = vcmp.lt.f32.partialorder %v214_v57, 0.0004427343  ;;  %v151_v33 = vld [vmem:[%s727_s30 + $0x68] sm:$0xff]  ;;  %p543_p13 = por %p542_p9, %p541_p8 }
  0x49   : > { %298 = vst [vmem:[%s785_s17] sm:$0xff] %v162_v54  ;;  %v171_v60 = vsel %vm746_vm1, %v168_v34, %v165_v51  ;;  %v183_v1 = vmul.f32 0.6931472, %v479_v59  ;;  %v481_v4 = vpop.eup %480  ;;  %v238_v13 = vmul.f32 -0.5, %v773_v49  ;;  %v213_v15 = vmul.f32 %v212_v62, %v740_v21 }
  0x4a   : > { %299 = vst [vmem:[%s785_s17 + $0x8] sm:$0xff] %v171_v60  ;;  %v180_v0 = vsel %vm757_vm2, %v177_v35, %v174_v55  ;;  %v483_v9 = vpop.eup %482  ;;  %v192_v11 = vmul.f32 0.6931472, %v481_v4  ;;  %v232_v16 = vand.u32 2147483647, %v755_v32  ;;  %492 = vlog2.f32 %v244_v7  ;;  %p544_p1 = pnand %p543_p13, %p537_p12 }
  0x4b   : > { %300 = vst [vmem:[%s785_s17 + $0x10] sm:$0xff] %v180_v0  ;;  %v189_v10 = vsel %vm761_vm3, %v186_v47, %v183_v1  ;;  %v201_v14 = vmul.f32 0.6931472, %v483_v9  ;;  %vm819_vm7 = vcmp.lt.f32.partialorder %v223_v3, 0.0004427343  ;;  %v247_v22 = vmul.f32 -0.5, %v781_v58 }
  0x4c   : > { %301 = vst [vmem:[%s785_s17 + $0x18] sm:$0xff] %v189_v10  ;;  %v485_v18 = vpop.eup %484  ;;  %v198_v19 = vsel %vm766_vm4, %v195_v56, %v192_v11  ;;  %v253_v23 = vadd.f32 1.0, %v802_v8  ;;  %v222_v25 = vmul.f32 %v221_v5, %v751_v28  ;;  %v231_v26 = vmul.f32 %v230_v6, %v755_v32  ;;  %v153_v47 = vld [vmem:[%s727_s30 + $0x78] sm:$0xff] }
  0x4d   : > { %302 = vst [vmem:[%s785_s17 + $0x20] sm:$0xff] %v198_v19  ;;  %v207_v21 = vsel %vm790_vm5, %v204_v2, %v201_v14  ;;  %v210_v24 = vmul.f32 0.6931472, %v485_v18  ;;  %v239_v29 = vadd.f32 1.0, %v238_v13  ;;  %v241_v30 = vand.u32 2147483647, %v773_v49 }
  0x4e   : > { %v487_v27 = vpop.eup %486  ;;  %303 = vst [vmem:[%s785_s17 + $0x28] sm:$0xff] %v207_v21  ;;  %494 = vlog2.f32 %v253_v23  ;;  %v262_v31 = vadd.f32 1.0, %v815_v17  ;;  %vm836_vm8 = vcmp.lt.f32.partialorder %v232_v16, 0.0004427343  ;;  %v256_v32 = vmul.f32 -0.5, %v802_v8 }
  0x4f   : > { %v489_v34 = vpop.eup %488  ;;  %v216_v35 = vsel %vm806_vm6, %v213_v15, %v210_v24  ;;  %v219_v36 = vmul.f32 0.6931472, %v487_v27  ;;  %v248_v39 = vadd.f32 1.0, %v247_v22  ;;  %v250_v41 = vand.u32 2147483647, %v781_v58 }
  0x50   : > { %304 = vst [vmem:[%s785_s17 + $0x30] sm:$0xff] %v216_v35  ;;  %v228_v38 = vmul.f32 0.6931472, %v489_v34  ;;  %496 = vlog2.f32 %v262_v31  ;;  %v265_v42 = vmul.f32 -0.5, %v815_v17  ;;  %v271_v43 = vadd.f32 1.0, %v151_v33 }
  0x51   : > { %v225_v40 = vsel %vm819_vm7, %v222_v25, %v219_v36  ;;  %v240_v45 = vmul.f32 %v239_v29, %v773_v49  ;;  %v280_v46 = vadd.f32 1.0, %v152_v37  ;;  %vm853_vm9 = vcmp.lt.f32.partialorder %v241_v30, 0.0004427343 }
  0x52   : > { %305 = vst [vmem:[%s785_s17 + $0x38] sm:$0xff] %v225_v40  ;;  %v234_v44 = vsel %vm836_vm8, %v231_v26, %v228_v38  ;;  %v491_v48 = vpop.eup %490  ;;  %v257_v51 = vadd.f32 1.0, %v256_v32  ;;  %v259_v52 = vand.u32 2147483647, %v802_v8  ;;  %498 = vlog2.f32 %v271_v43 }
  0x53   : > { %306 = vst [vmem:[%s785_s17 + $0x40] sm:$0xff] %v234_v44  ;;  %v237_v53 = vmul.f32 0.6931472, %v491_v48  ;;  %v249_v54 = vmul.f32 %v248_v39, %v781_v58  ;;  %v274_v55 = vmul.f32 -0.5, %v151_v33  ;;  %500 = vlog2.f32 %v280_v46 }
  0x54   : > { %v493_v56 = vpop.eup %492  ;;  %vm251_vm10 = vcmp.lt.f32.partialorder %v250_v41, 0.0004427343  ;;  %v266_v49 = vadd.f32 1.0, %v265_v42  ;;  %v283_v57 = vmul.f32 -0.5, %v152_v37  ;;  %v289_v59 = vadd.f32 1.0, %v153_v47 }
  0x55   : > { %v243_v60 = vsel %vm853_vm9, %v240_v45, %v237_v53  ;;  %v246_v61 = vmul.f32 0.6931472, %v493_v56  ;;  %v268_v62 = vand.u32 2147483647, %v815_v17  ;;  %v258_v63 = vmul.f32 %v257_v51, %v802_v8 }
  0x56   : > { %307 = vst [vmem:[%s785_s17 + $0x48] sm:$0xff] %v243_v60  ;;  %502 = vlog2.f32 %v289_v59  ;;  %vm260_vm11 = vcmp.lt.f32.partialorder %v259_v52, 0.0004427343  ;;  %v275_v1 = vadd.f32 1.0, %v274_v55  ;;  %v292_v2 = vmul.f32 -0.5, %v153_v47 }
  0x57   : > { %v252_v0 = vsel %vm251_vm10, %v249_v54, %v246_v61  ;;  %v267_v4 = vmul.f32 %v266_v49, %v815_v17  ;;  %v277_v5 = vand.u32 2147483647, %v151_v33  ;;  %v284_v6 = vadd.f32 1.0, %v283_v57 }
  0x58   : > { %v495_v58 = vpop.eup %494  ;;  %308 = vst [vmem:[%s785_s17 + $0x50] sm:$0xff] %v252_v0  ;;  %vm269_vm12 = vcmp.lt.f32.partialorder %v268_v62, 0.0004427343  ;;  %v286_v9 = vand.u32 2147483647, %v152_v37  ;;  %v276_v11 = vmul.f32 %v275_v1, %v151_v33  ;;  %v293_v12 = vadd.f32 1.0, %v292_v2 }
  0x59   : > { %v255_v3 = vmul.f32 0.6931472, %v495_v58  ;;  %vm278_vm13 = vcmp.lt.f32.partialorder %v277_v5, 0.0004427343  ;;  %v285_v15 = vmul.f32 %v284_v6, %v152_v37  ;;  %v295_v16 = vand.u32 2147483647, %v153_v47 }
  0x5a   : > { %v497_v7 = vpop.eup %496  ;;  %vm287_vm14 = vcmp.lt.f32.partialorder %v286_v9, 0.0004427343  ;;  %v294_v22 = vmul.f32 %v293_v12, %v153_v47 }
  0x5b   : > { %v261_v10 = vsel %vm260_vm11, %v258_v63, %v255_v3  ;;  %v264_v8 = vmul.f32 0.6931472, %v497_v7  ;;  %vm296_vm15 = vcmp.lt.f32.partialorder %v295_v16, 0.0004427343 }
  0x5c   : > { %309 = vst [vmem:[%s785_s17 + $0x58] sm:$0xff] %v261_v10  ;;  %v499_v13 = vpop.eup %498 }
  0x5d   : > { %v270_v14 = vsel %vm269_vm12, %v267_v4, %v264_v8  ;;  %v501_v17 = vpop.eup %500  ;;  %v273_v18 = vmul.f32 0.6931472, %v499_v13 }
  0x5e   : > { %310 = vst [vmem:[%s785_s17 + $0x60] sm:$0xff] %v270_v14  ;;  %v282_v19 = vmul.f32 0.6931472, %v501_v17 }
  0x5f   : > { %v279_v20 = vsel %vm278_vm13, %v276_v11, %v273_v18 }
  0x60   : > { %v503_v23 = vpop.eup %502  ;;  %311 = vst [vmem:[%s785_s17 + $0x68] sm:$0xff] %v279_v20  ;;  %v288_v21 = vsel %vm287_vm14, %v285_v15, %v282_v19 }
  0x61   : > { %312 = vst [vmem:[%s785_s17 + $0x70] sm:$0xff] %v288_v21  ;;  %v291_v24 = vmul.f32 0.6931472, %v503_v23 }
  0x63   : > { %v297_v25 = vsel %vm296_vm15, %v294_v22, %v291_v24 }
  0x64   : > { %313 = vst [vmem:[%s785_s17 + $0x78] sm:$0xff] %v297_v25 }
  0x65   : > { %547 = shalt.err (!%p544_p1)
}
  0x66   : > { %s548_s13 = scalar_lea.hbm %s875_s2, 2048  ;;  %s552_s20 = scalar_lea.hbm %s922_s1, 8192 }
  0x67   : > { %p549_p3 = scmp.ne.s32.totalorder %s875_s2, %s548_s13  ;;  %p553_p0 = scmp.lt.u32.totalorder %s875_s2, %s922_s1 }
  0x68   : > { %p554_p2 = scmp.lt.u32.totalorder %s552_s20, %s548_s13  ;;  %p556_p6 = scmp.lt.u32.totalorder %s548_s13, %s875_s2 }
  0x69   : > { %p550_p4 = pnand %p549_p3, %p949_p10 }
  0x6a   : > { %p555_p7 = por %p554_p2, %p553_p0 }
  0x6b   : > { %p551_p5 = pneg %p550_p4 }
  0x6c   : > { %p557_p11 = por %p556_p6, %p555_p7 }
  0x6e   : > { %p558_p12 = pnand %p557_p11, %p551_p5 }
  0x70   : > { %561 = shalt.err (!%p558_p12)
}
  0x71   : > { %s606_s24 = smov 512   ;;  %s607_s26 = smov 32  }
  0x72   : > { %424 = dma.vmem_to_hbm [thread:$0]  (%p949_p10), %s877_s27, 2048, %s875_s2, %s315_s10, %s606_s24, %s606_s24, %s607_s26  }
  0x73 PF: > { %p435_p8 = scmp.ge.s32.totalorder %s600_s9, 2  ;;  %s344_s30 = sand.u32 1, %s588_s6  }
  0x74   : > { %p950_p9 = scmp.ne.s32.totalorder %s927_s19, 0  ;;  %s345_s17 = scalar_lea.sflag [#allocation4], %s344_s30 }
  0x76   : > { %p431_p13 = pnand %p435_p8, %p950_p9 }
  0x78   : > { %583 = dma.done.wait (!%p431_p13), %s345_s17, 2048  }
  0x79   : > { %585 = vsyncadd (!%p431_p13), %s345_s17, 4294965248  ;;  %p14_p1 = scmp.ge.s32.totalorder %s643_s12, 6   ;;  %s951_s6 = smov %s592_s7 }
  0x7a   : > { %s952_s7 = smov %s596_s8  ;;  %s953_s8 = smov %s655_s15 }
  0x7b   : > { %s954_s9 = smov %s643_s12  ;;  %16 = sbr.rel (!%p14_p1) target bundleno = 5 (0x5), region = 69 }
  0x82   :  { %350 = vsyncpa [#allocation3], 1 }
  0x83   :  { %352 = vsyncpa [#allocation3 + $0x1], 1 }
  0x84   :  { %353 = vsyncpa [#allocation4], 1 }
  0x85   :  { %355 = vsyncpa [#allocation4 + $0x1], 1 }

</bundles_post_ra>
